<compile_context>
chip_gen: v7x
topology: tpu7x:2x2x1
jax: 0.10.0
libtpu: 0.0.40
codegen_flags: <defaults>
</compile_context>

<pallas_src>
import jax
import jax.numpy as jnp
from jax.experimental import pallas as pl
from jax.experimental.pallas import tpu as pltpu


def fm_interaction_kernel(lid_ref, lv_ref, rid_ref, rv_ref,
                          ltab_ref, rtab_ref, o_ref):
    # lid_ref : (nL, B) int32  SMEM   left non-zero feature ids (long axis last)
    # lv_ref  : (nL, B) f32    SMEM   left non-zero feature values
    # rid_ref : (nR, B) int32  SMEM   right non-zero feature ids
    # rv_ref  : (nR, B) f32    SMEM   right non-zero feature values
    # ltab_ref: (left_feature_num,  F) f32 VMEM  (resident: constant index_map)
    # rtab_ref: (right_feature_num, F) f32 VMEM  (resident: constant index_map)
    # o_ref   : (1, B_pad) f32 VMEM   lane-dense output block, resident across grid
    b = pl.program_id(0)
    factor_num = ltab_ref.shape[1]

    @pl.when(b == 0)
    def _init():
        o_ref[...] = jnp.zeros_like(o_ref)

    def weighted_row_sum(tab_ref, id_ref, val_ref):
        n = id_ref.shape[0]
        # Two interleaved accumulators break the serial vadd dependency chain.
        # TODO(synk): for large nnz switch to lax.fori_loop(..., unroll=True),
        # and/or stack the gathered rows into an (8, F) sublane block so one
        # vmul + one XLU sublane-reduce replaces n near-empty VALU ops.
        acc0 = jnp.zeros((1, factor_num), jnp.float32)
        acc1 = jnp.zeros((1, factor_num), jnp.float32)
        for i in range(n):  # static unroll; nnz known at trace time (here 8)
            row = tab_ref[pl.ds(id_ref[i, b], 1), :]      # dynamic row gather -> (1, F)
            term = val_ref[i, b] * row
            if i % 2 == 0:
                acc0 = acc0 + term
            else:
                acc1 = acc1 + term
        return acc0 + acc1

    a = weighted_row_sum(ltab_ref, lid_ref, lv_ref)       # (1, F) = lv @ L[lids]
    c = weighted_row_sum(rtab_ref, rid_ref, rv_ref)       # (1, F) = rv @ R[rids]
    result = jnp.sum(a * c)                                # scalar for this example

    # Scatter this example's scalar into its lane of the resident output block.
    lane = jax.lax.broadcasted_iota(jnp.int32, o_ref.shape, dimension=1)
    o_ref[...] = jnp.where(lane == b, result, o_ref[...])


def fm_interaction_batched(left_factor_table, right_factor_table,
                           left_ids, left_vals, right_ids, right_vals):
    """Batched FmInteraction forward.

    left_ids/right_ids: (B, nnz) int, left_vals/right_vals: (B, nnz) f32.
    Returns (B,) f32, one FM interaction scalar per example.
    """
    batch, n_left = left_ids.shape
    _, n_right = right_ids.shape
    factor_num = left_factor_table.shape[1]
    b_pad = ((batch + 127) // 128) * 128   # lane-dense output tile width

    # Clamp ids: dynamic VMEM gathers have no runtime bounds check.
    lid = jnp.clip(left_ids.astype(jnp.int32), 0, left_factor_table.shape[0] - 1).T
    rid = jnp.clip(right_ids.astype(jnp.int32), 0, right_factor_table.shape[0] - 1).T
    lv = left_vals.reshape(batch, n_left).astype(jnp.float32).T     # (nL, B)
    rv = right_vals.reshape(batch, n_right).astype(jnp.float32).T   # (nR, B)

    cost = pl.CostEstimate(
        flops=int(2 * batch * (n_left + n_right + 1) * factor_num),
        transcendentals=0,
        bytes_accessed=int(
            4 * (left_factor_table.size + right_factor_table.size)   # tables (once)
            + 4 * 2 * batch * (n_left + n_right)                      # ids + vals
            + 4 * b_pad                                               # output
        ),
    )

    smem = pl.BlockSpec(memory_space=pltpu.MemorySpace.SMEM)
    grid_spec = pltpu.PrefetchScalarGridSpec(
        num_scalar_prefetch=0,
        grid=(batch,),
        in_specs=[
            smem, smem, smem, smem,
            # Constant index_map -> tables DMA'd once, VMEM-resident all grid long.
            pl.BlockSpec(left_factor_table.shape, lambda b: (0, 0)),
            pl.BlockSpec(right_factor_table.shape, lambda b: (0, 0)),
        ],
        # Constant index_map -> single lane-dense output block, one HBM writeback.
        out_specs=pl.BlockSpec((1, b_pad), lambda b: (0, 0)),
    )

    out = pl.pallas_call(
        fm_interaction_kernel,
        out_shape=jax.ShapeDtypeStruct((1, b_pad), jnp.float32),
        grid_spec=grid_spec,
        # Output block is revisited every step -> batch axis must be "arbitrary".
        # TODO(synk): re-derive vmem_limit_bytes (v7x: 64 MiB/TC) if tables or
        # batch tiles are ever scaled up; today's footprint is ~20 KiB.
        compiler_params=pltpu.CompilerParams(dimension_semantics=("arbitrary",)),
        cost_estimate=cost,
    )(
        lid, lv, rid, rv,
        left_factor_table.astype(jnp.float32),
        right_factor_table.astype(jnp.float32),
    )
    return out[0, :batch]


def fm_interaction(left_factor_table, right_factor_table,
                   left_ids, left_vals, right_ids, right_vals):
    """Single-example forward matching the PyTorch module signature:
    left_ids (nL,), left_vals (1, nL), right_ids (nR,), right_vals (1, nR)."""
    out = fm_interaction_batched(
        left_factor_table, right_factor_table,
        left_ids[None, :], left_vals.reshape(1, -1),
        right_ids[None, :], right_vals.reshape(1, -1))
    return out[0]


if __name__ == "__main__":
    # Module hyperparameters (shapes implied by __init__).
    left_feature_num = 16
    right_feature_num = 12
    factor_num = 32

    # Non-zero feature counts per example and batch size (one example per lane).
    n_left = 8
    n_right = 8
    batch = 128

    key = jax.random.PRNGKey(0)
    k1, k2, k3, k4, k5, k6 = jax.random.split(key, 6)

    # Deterministic parameter init (torch.nn.init.normal_ -> standard normal).
    left_feature_factors = jax.random.normal(
        k1, (left_feature_num, factor_num), dtype=jnp.float32)
    right_feature_factors = jax.random.normal(
        k2, (right_feature_num, factor_num), dtype=jnp.float32)

    # Deterministic example inputs.
    left_ids = jax.random.randint(k3, (batch, n_left), 0, left_feature_num)
    right_ids = jax.random.randint(k4, (batch, n_right), 0, right_feature_num)
    left_vals = jax.random.normal(k5, (batch, n_left), dtype=jnp.float32)
    right_vals = jax.random.normal(k6, (batch, n_right), dtype=jnp.float32)

    out = fm_interaction_batched(left_feature_factors, right_feature_factors,
                                 left_ids, left_vals, right_ids, right_vals)
    out = jax.block_until_ready(out)

    # Pure-JAX reference (mirrors the PyTorch forward per example).
    lf = left_feature_factors[left_ids]      # (B, nL, F)
    rf = right_feature_factors[right_ids]    # (B, nR, F)
    pair = jnp.einsum('bif,bjf->bij', lf, rf)
    ref = jnp.einsum('bij,bi,bj->b', pair, left_vals, right_vals)

    assert out.shape == (batch,)
    # Algebraic rewrite changes f32 summation order; allow small slack.
    assert jnp.allclose(out, ref, rtol=1e-3, atol=1e-3), (out[:4], ref[:4])

    # Also exercise the module-faithful single-example signature.
    out0 = fm_interaction(left_feature_factors, right_feature_factors,
                          left_ids[0], left_vals[0:1], right_ids[0], right_vals[0:1])
    out0 = jax.block_until_ready(out0)
    assert jnp.allclose(out0, ref[0], rtol=1e-3, atol=1e-3), (out0, ref[0])

    print("KERNEL_OK")
</pallas_src>

<mosaic_0001>
module attributes {stable_mosaic.version = 11 : i64} {
  func.func @fm_interaction_kernel(%arg0: i32, %arg1: memref<8x128xi32, #tpu.memory_space<smem>>, %arg2: memref<8x128xf32, #tpu.memory_space<smem>>, %arg3: memref<8x128xi32, #tpu.memory_space<smem>>, %arg4: memref<8x128xf32, #tpu.memory_space<smem>>, %arg5: memref<16x32xf32, #tpu.memory_space<vmem>>, %arg6: memref<12x32xf32, #tpu.memory_space<vmem>>, %arg7: memref<1x128xf32, #tpu.memory_space<vmem>>) attributes {dimension_semantics = [#tpu.dimension_semantics<arbitrary>], iteration_bounds = array<i64: 128>, scalar_prefetch = 0 : i64, scratch_operands = 0 : i64, tpu.core_type = #tpu.core_type<tc>, window_params = [{transform_indices = @transform_0, window_bounds = array<i64: 8, 128>}, {transform_indices = @transform_1, window_bounds = array<i64: 8, 128>}, {transform_indices = @transform_2, window_bounds = array<i64: 8, 128>}, {transform_indices = @transform_3, window_bounds = array<i64: 8, 128>}, {pipeline_mode = #tpu.pipeline_mode<synchronous>, transform_indices = @transform_4, window_bounds = array<i64: 16, 32>}, {pipeline_mode = #tpu.pipeline_mode<synchronous>, transform_indices = @transform_5, window_bounds = array<i64: 12, 32>}, {pipeline_mode = #tpu.pipeline_mode<synchronous>, transform_indices = @transform_6, window_bounds = array<i64: 1, 128>}]} {
    %c0_i32 = arith.constant 0 : i32
    %0 = arith.cmpi eq, %arg0, %c0_i32 : i32
    %1 = arith.extui %0 : i1 to i32
    %c0_i32_0 = arith.constant 0 : i32
    %2 = arith.cmpi ne, %1, %c0_i32_0 : i32
    scf.if %2 {
      %cst_49 = arith.constant 0.000000e+00 : f32
      %165 = vector.broadcast %cst_49 : f32 to vector<1x128xf32>
      %c0_50 = arith.constant 0 : index
      %c0_51 = arith.constant 0 : index
      %166 = vector.load %arg7[%c0_50, %c0_51] : memref<1x128xf32, #tpu.memory_space<vmem>>, vector<1x128xf32>
      tpu.vector_store %arg7[%c0_50, %c0_51], %165 {strides = array<i32>} : memref<1x128xf32, #tpu.memory_space<vmem>>, vector<1x128xf32>,
    } else {
    }
    %cst = arith.constant 0.000000e+00 : f32
    %3 = vector.broadcast %cst : f32 to vector<1x32xf32>
    %cst_1 = arith.constant 0.000000e+00 : f32
    %4 = vector.broadcast %cst_1 : f32 to vector<1x32xf32>
    %c0 = arith.constant 0 : index
    %5 = arith.index_cast %arg0 : i32 to index
    %6 = memref.load %arg1[%c0, %5] : memref<8x128xi32, #tpu.memory_space<smem>>
    %7 = arith.index_cast %6 : i32 to index
    %c0_2 = arith.constant 0 : index
    %8 = vector.load %arg5[%7, %c0_2] : memref<16x32xf32, #tpu.memory_space<vmem>>, vector<1x32xf32>
    %c0_3 = arith.constant 0 : index
    %9 = arith.index_cast %arg0 : i32 to index
    %10 = memref.load %arg2[%c0_3, %9] : memref<8x128xf32, #tpu.memory_space<smem>>
    %11 = vector.broadcast %10 : f32 to vector<1x32xf32>
    %12 = arith.mulf %11, %8 : vector<1x32xf32>
    %13 = arith.addf %3, %12 : vector<1x32xf32>
    %c1 = arith.constant 1 : index
    %14 = arith.index_cast %arg0 : i32 to index
    %15 = memref.load %arg1[%c1, %14] : memref<8x128xi32, #tpu.memory_space<smem>>
    %16 = arith.index_cast %15 : i32 to index
    %c0_4 = arith.constant 0 : index
    %17 = vector.load %arg5[%16, %c0_4] : memref<16x32xf32, #tpu.memory_space<vmem>>, vector<1x32xf32>
    %c1_5 = arith.constant 1 : index
    %18 = arith.index_cast %arg0 : i32 to index
    %19 = memref.load %arg2[%c1_5, %18] : memref<8x128xf32, #tpu.memory_space<smem>>
    %20 = vector.broadcast %19 : f32 to vector<1x32xf32>
    %21 = arith.mulf %20, %17 : vector<1x32xf32>
    %22 = arith.addf %4, %21 : vector<1x32xf32>
    %c2 = arith.constant 2 : index
    %23 = arith.index_cast %arg0 : i32 to index
    %24 = memref.load %arg1[%c2, %23] : memref<8x128xi32, #tpu.memory_space<smem>>
    %25 = arith.index_cast %24 : i32 to index
    %c0_6 = arith.constant 0 : index
    %26 = vector.load %arg5[%25, %c0_6] : memref<16x32xf32, #tpu.memory_space<vmem>>, vector<1x32xf32>
    %c2_7 = arith.constant 2 : index
    %27 = arith.index_cast %arg0 : i32 to index
    %28 = memref.load %arg2[%c2_7, %27] : memref<8x128xf32, #tpu.memory_space<smem>>
    %29 = vector.broadcast %28 : f32 to vector<1x32xf32>
    %30 = arith.mulf %29, %26 : vector<1x32xf32>
    %31 = arith.addf %13, %30 : vector<1x32xf32>
    %c3 = arith.constant 3 : index
    %32 = arith.index_cast %arg0 : i32 to index
    %33 = memref.load %arg1[%c3, %32] : memref<8x128xi32, #tpu.memory_space<smem>>
    %34 = arith.index_cast %33 : i32 to index
    %c0_8 = arith.constant 0 : index
    %35 = vector.load %arg5[%34, %c0_8] : memref<16x32xf32, #tpu.memory_space<vmem>>, vector<1x32xf32>
    %c3_9 = arith.constant 3 : index
    %36 = arith.index_cast %arg0 : i32 to index
    %37 = memref.load %arg2[%c3_9, %36] : memref<8x128xf32, #tpu.memory_space<smem>>
    %38 = vector.broadcast %37 : f32 to vector<1x32xf32>
    %39 = arith.mulf %38, %35 : vector<1x32xf32>
    %40 = arith.addf %22, %39 : vector<1x32xf32>
    %c4 = arith.constant 4 : index
    %41 = arith.index_cast %arg0 : i32 to index
    %42 = memref.load %arg1[%c4, %41] : memref<8x128xi32, #tpu.memory_space<smem>>
    %43 = arith.index_cast %42 : i32 to index
    %c0_10 = arith.constant 0 : index
    %44 = vector.load %arg5[%43, %c0_10] : memref<16x32xf32, #tpu.memory_space<vmem>>, vector<1x32xf32>
    %c4_11 = arith.constant 4 : index
    %45 = arith.index_cast %arg0 : i32 to index
    %46 = memref.load %arg2[%c4_11, %45] : memref<8x128xf32, #tpu.memory_space<smem>>
    %47 = vector.broadcast %46 : f32 to vector<1x32xf32>
    %48 = arith.mulf %47, %44 : vector<1x32xf32>
    %49 = arith.addf %31, %48 : vector<1x32xf32>
    %c5 = arith.constant 5 : index
    %50 = arith.index_cast %arg0 : i32 to index
    %51 = memref.load %arg1[%c5, %50] : memref<8x128xi32, #tpu.memory_space<smem>>
    %52 = arith.index_cast %51 : i32 to index
    %c0_12 = arith.constant 0 : index
    %53 = vector.load %arg5[%52, %c0_12] : memref<16x32xf32, #tpu.memory_space<vmem>>, vector<1x32xf32>
    %c5_13 = arith.constant 5 : index
    %54 = arith.index_cast %arg0 : i32 to index
    %55 = memref.load %arg2[%c5_13, %54] : memref<8x128xf32, #tpu.memory_space<smem>>
    %56 = vector.broadcast %55 : f32 to vector<1x32xf32>
    %57 = arith.mulf %56, %53 : vector<1x32xf32>
    %58 = arith.addf %40, %57 : vector<1x32xf32>
    %c6 = arith.constant 6 : index
    %59 = arith.index_cast %arg0 : i32 to index
    %60 = memref.load %arg1[%c6, %59] : memref<8x128xi32, #tpu.memory_space<smem>>
    %61 = arith.index_cast %60 : i32 to index
    %c0_14 = arith.constant 0 : index
    %62 = vector.load %arg5[%61, %c0_14] : memref<16x32xf32, #tpu.memory_space<vmem>>, vector<1x32xf32>
    %c6_15 = arith.constant 6 : index
    %63 = arith.index_cast %arg0 : i32 to index
    %64 = memref.load %arg2[%c6_15, %63] : memref<8x128xf32, #tpu.memory_space<smem>>
    %65 = vector.broadcast %64 : f32 to vector<1x32xf32>
    %66 = arith.mulf %65, %62 : vector<1x32xf32>
    %67 = arith.addf %49, %66 : vector<1x32xf32>
    %c7 = arith.constant 7 : index
    %68 = arith.index_cast %arg0 : i32 to index
    %69 = memref.load %arg1[%c7, %68] : memref<8x128xi32, #tpu.memory_space<smem>>
    %70 = arith.index_cast %69 : i32 to index
    %c0_16 = arith.constant 0 : index
    %71 = vector.load %arg5[%70, %c0_16] : memref<16x32xf32, #tpu.memory_space<vmem>>, vector<1x32xf32>
    %c7_17 = arith.constant 7 : index
    %72 = arith.index_cast %arg0 : i32 to index
    %73 = memref.load %arg2[%c7_17, %72] : memref<8x128xf32, #tpu.memory_space<smem>>
    %74 = vector.broadcast %73 : f32 to vector<1x32xf32>
    %75 = arith.mulf %74, %71 : vector<1x32xf32>
    %76 = arith.addf %58, %75 : vector<1x32xf32>
    %77 = arith.addf %67, %76 : vector<1x32xf32>
    %cst_18 = arith.constant 0.000000e+00 : f32
    %78 = vector.broadcast %cst_18 : f32 to vector<1x32xf32>
    %cst_19 = arith.constant 0.000000e+00 : f32
    %79 = vector.broadcast %cst_19 : f32 to vector<1x32xf32>
    %c0_20 = arith.constant 0 : index
    %80 = arith.index_cast %arg0 : i32 to index
    %81 = memref.load %arg3[%c0_20, %80] : memref<8x128xi32, #tpu.memory_space<smem>>
    %82 = arith.index_cast %81 : i32 to index
    %c0_21 = arith.constant 0 : index
    %83 = vector.load %arg6[%82, %c0_21] : memref<12x32xf32, #tpu.memory_space<vmem>>, vector<1x32xf32>
    %c0_22 = arith.constant 0 : index
    %84 = arith.index_cast %arg0 : i32 to index
    %85 = memref.load %arg4[%c0_22, %84] : memref<8x128xf32, #tpu.memory_space<smem>>
    %86 = vector.broadcast %85 : f32 to vector<1x32xf32>
    %87 = arith.mulf %86, %83 : vector<1x32xf32>
    %88 = arith.addf %78, %87 : vector<1x32xf32>
    %c1_23 = arith.constant 1 : index
    %89 = arith.index_cast %arg0 : i32 to index
    %90 = memref.load %arg3[%c1_23, %89] : memref<8x128xi32, #tpu.memory_space<smem>>
    %91 = arith.index_cast %90 : i32 to index
    %c0_24 = arith.constant 0 : index
    %92 = vector.load %arg6[%91, %c0_24] : memref<12x32xf32, #tpu.memory_space<vmem>>, vector<1x32xf32>
    %c1_25 = arith.constant 1 : index
    %93 = arith.index_cast %arg0 : i32 to index
    %94 = memref.load %arg4[%c1_25, %93] : memref<8x128xf32, #tpu.memory_space<smem>>
    %95 = vector.broadcast %94 : f32 to vector<1x32xf32>
    %96 = arith.mulf %95, %92 : vector<1x32xf32>
    %97 = arith.addf %79, %96 : vector<1x32xf32>
    %c2_26 = arith.constant 2 : index
    %98 = arith.index_cast %arg0 : i32 to index
    %99 = memref.load %arg3[%c2_26, %98] : memref<8x128xi32, #tpu.memory_space<smem>>
    %100 = arith.index_cast %99 : i32 to index
    %c0_27 = arith.constant 0 : index
    %101 = vector.load %arg6[%100, %c0_27] : memref<12x32xf32, #tpu.memory_space<vmem>>, vector<1x32xf32>
    %c2_28 = arith.constant 2 : index
    %102 = arith.index_cast %arg0 : i32 to index
    %103 = memref.load %arg4[%c2_28, %102] : memref<8x128xf32, #tpu.memory_space<smem>>
    %104 = vector.broadcast %103 : f32 to vector<1x32xf32>
    %105 = arith.mulf %104, %101 : vector<1x32xf32>
    %106 = arith.addf %88, %105 : vector<1x32xf32>
    %c3_29 = arith.constant 3 : index
    %107 = arith.index_cast %arg0 : i32 to index
    %108 = memref.load %arg3[%c3_29, %107] : memref<8x128xi32, #tpu.memory_space<smem>>
    %109 = arith.index_cast %108 : i32 to index
    %c0_30 = arith.constant 0 : index
    %110 = vector.load %arg6[%109, %c0_30] : memref<12x32xf32, #tpu.memory_space<vmem>>, vector<1x32xf32>
    %c3_31 = arith.constant 3 : index
    %111 = arith.index_cast %arg0 : i32 to index
    %112 = memref.load %arg4[%c3_31, %111] : memref<8x128xf32, #tpu.memory_space<smem>>
    %113 = vector.broadcast %112 : f32 to vector<1x32xf32>
    %114 = arith.mulf %113, %110 : vector<1x32xf32>
    %115 = arith.addf %97, %114 : vector<1x32xf32>
    %c4_32 = arith.constant 4 : index
    %116 = arith.index_cast %arg0 : i32 to index
    %117 = memref.load %arg3[%c4_32, %116] : memref<8x128xi32, #tpu.memory_space<smem>>
    %118 = arith.index_cast %117 : i32 to index
    %c0_33 = arith.constant 0 : index
    %119 = vector.load %arg6[%118, %c0_33] : memref<12x32xf32, #tpu.memory_space<vmem>>, vector<1x32xf32>
    %c4_34 = arith.constant 4 : index
    %120 = arith.index_cast %arg0 : i32 to index
    %121 = memref.load %arg4[%c4_34, %120] : memref<8x128xf32, #tpu.memory_space<smem>>
    %122 = vector.broadcast %121 : f32 to vector<1x32xf32>
    %123 = arith.mulf %122, %119 : vector<1x32xf32>
    %124 = arith.addf %106, %123 : vector<1x32xf32>
    %c5_35 = arith.constant 5 : index
    %125 = arith.index_cast %arg0 : i32 to index
    %126 = memref.load %arg3[%c5_35, %125] : memref<8x128xi32, #tpu.memory_space<smem>>
    %127 = arith.index_cast %126 : i32 to index
    %c0_36 = arith.constant 0 : index
    %128 = vector.load %arg6[%127, %c0_36] : memref<12x32xf32, #tpu.memory_space<vmem>>, vector<1x32xf32>
    %c5_37 = arith.constant 5 : index
    %129 = arith.index_cast %arg0 : i32 to index
    %130 = memref.load %arg4[%c5_37, %129] : memref<8x128xf32, #tpu.memory_space<smem>>
    %131 = vector.broadcast %130 : f32 to vector<1x32xf32>
    %132 = arith.mulf %131, %128 : vector<1x32xf32>
    %133 = arith.addf %115, %132 : vector<1x32xf32>
    %c6_38 = arith.constant 6 : index
    %134 = arith.index_cast %arg0 : i32 to index
    %135 = memref.load %arg3[%c6_38, %134] : memref<8x128xi32, #tpu.memory_space<smem>>
    %136 = arith.index_cast %135 : i32 to index
    %c0_39 = arith.constant 0 : index
    %137 = vector.load %arg6[%136, %c0_39] : memref<12x32xf32, #tpu.memory_space<vmem>>, vector<1x32xf32>
    %c6_40 = arith.constant 6 : index
    %138 = arith.index_cast %arg0 : i32 to index
    %139 = memref.load %arg4[%c6_40, %138] : memref<8x128xf32, #tpu.memory_space<smem>>
    %140 = vector.broadcast %139 : f32 to vector<1x32xf32>
    %141 = arith.mulf %140, %137 : vector<1x32xf32>
    %142 = arith.addf %124, %141 : vector<1x32xf32>
    %c7_41 = arith.constant 7 : index
    %143 = arith.index_cast %arg0 : i32 to index
    %144 = memref.load %arg3[%c7_41, %143] : memref<8x128xi32, #tpu.memory_space<smem>>
    %145 = arith.index_cast %144 : i32 to index
    %c0_42 = arith.constant 0 : index
    %146 = vector.load %arg6[%145, %c0_42] : memref<12x32xf32, #tpu.memory_space<vmem>>, vector<1x32xf32>
    %c7_43 = arith.constant 7 : index
    %147 = arith.index_cast %arg0 : i32 to index
    %148 = memref.load %arg4[%c7_43, %147] : memref<8x128xf32, #tpu.memory_space<smem>>
    %149 = vector.broadcast %148 : f32 to vector<1x32xf32>
    %150 = arith.mulf %149, %146 : vector<1x32xf32>
    %151 = arith.addf %133, %150 : vector<1x32xf32>
    %152 = arith.addf %142, %151 : vector<1x32xf32>
    %153 = arith.mulf %77, %152 : vector<1x32xf32>
    %154 = vector.shape_cast %153 : vector<1x32xf32> to vector<1x1x32xf32>
    %cst_44 = arith.constant dense<0.000000e+00> : vector<1xf32>
    %155 = vector.multi_reduction <add>, %154, %cst_44 [1, 2] : vector<1x1x32xf32> to vector<1xf32>
    %156 = vector.shape_cast %155 : vector<1xf32> to vector<1x1x1xf32>
    %157 = vector.extract %156[0, 0, 0] : f32 from vector<1x1x1xf32>
    %158 = tpu.iota {dimensions = array<i32: 1>} : vector<1x128xi32>
    %159 = vector.broadcast %arg0 : i32 to vector<1x128xi32>
    %160 = arith.cmpi eq, %158, %159 : vector<1x128xi32>
    %c0_45 = arith.constant 0 : index
    %c0_46 = arith.constant 0 : index
    %161 = vector.load %arg7[%c0_45, %c0_46] : memref<1x128xf32, #tpu.memory_space<vmem>>, vector<1x128xf32>
    %162 = vector.broadcast %157 : f32 to vector<1x128xf32>
    %163 = arith.select %160, %162, %161 : vector<1x128xi1>, vector<1x128xf32>
    %c0_47 = arith.constant 0 : index
    %c0_48 = arith.constant 0 : index
    %164 = vector.load %arg7[%c0_47, %c0_48] : memref<1x128xf32, #tpu.memory_space<vmem>>, vector<1x128xf32>
    tpu.vector_store %arg7[%c0_47, %c0_48], %163 {strides = array<i32>} : memref<1x128xf32, #tpu.memory_space<vmem>>, vector<1x128xf32>,
    return
  }
  func.func @transform_0(%arg0: i32) -> (i32, i32) {
    %c0_i32 = arith.constant 0 : i32
    %c0_i32_0 = arith.constant 0 : i32
    %c0_i32_1 = arith.constant 0 : i32
    return %c0_i32, %c0_i32_0 : i32, i32
  }
  func.func @transform_1(%arg0: i32) -> (i32, i32) {
    %c0_i32 = arith.constant 0 : i32
    %c0_i32_0 = arith.constant 0 : i32
    %c0_i32_1 = arith.constant 0 : i32
    return %c0_i32, %c0_i32_0 : i32, i32
  }
  func.func @transform_2(%arg0: i32) -> (i32, i32) {
    %c0_i32 = arith.constant 0 : i32
    %c0_i32_0 = arith.constant 0 : i32
    %c0_i32_1 = arith.constant 0 : i32
    return %c0_i32, %c0_i32_0 : i32, i32
  }
  func.func @transform_3(%arg0: i32) -> (i32, i32) {
    %c0_i32 = arith.constant 0 : i32
    %c0_i32_0 = arith.constant 0 : i32
    %c0_i32_1 = arith.constant 0 : i32
    return %c0_i32, %c0_i32_0 : i32, i32
  }
  func.func @transform_4(%arg0: i32) -> (i32, i32) {
    %c0_i32 = arith.constant 0 : i32
    %c0_i32_0 = arith.constant 0 : i32
    %c0_i32_1 = arith.constant 0 : i32
    return %c0_i32, %c0_i32_0 : i32, i32
  }
  func.func @transform_5(%arg0: i32) -> (i32, i32) {
    %c0_i32 = arith.constant 0 : i32
    %c0_i32_0 = arith.constant 0 : i32
    %c0_i32_1 = arith.constant 0 : i32
    return %c0_i32, %c0_i32_0 : i32, i32
  }
  func.func @transform_6(%arg0: i32) -> (i32, i32) {
    %c0_i32 = arith.constant 0 : i32
    %c0_i32_0 = arith.constant 0 : i32
    %c0_i32_1 = arith.constant 0 : i32
    return %c0_i32, %c0_i32_0 : i32, i32
  }
}

</mosaic_0001>

<bundles_post_ra>
// kernel: tpu_custom_call.1
= control target key start
LH: loop header
LB: loop body
LE: loop exit
PB: predicated region body
PF: predicated region fallthrough
CT: control target
= control target key end

     0   :  { %s1175_s0 = inlined_call_operand.hbm [shape: s32[8,128], index: 0, kind: input, shape index: {}]   ;;  %s1176_s1 = inlined_call_operand.hbm [shape: f32[8,128], index: 1, kind: input, shape index: {}]   ;;  %s1177_s2 = inlined_call_operand.hbm [shape: s32[8,128], index: 2, kind: input, shape index: {}]   ;;  %s1178_s3 = inlined_call_operand.hbm [shape: f32[8,128], index: 3, kind: input, shape index: {}]   ;;  %s1179_s4 = inlined_call_operand.hbm [shape: f32[16,32], index: 4, kind: input, shape index: {}]   ;;  %s1180_s5 = inlined_call_operand.vmem [shape: f32[12,32], index: 5, kind: input, shape index: {}]   ;;  %s1181_s6 = inlined_call_operand.hbm [shape: f32[1,128], index: 6, kind: output, shape index: {}]  }
   0x1   :  { %1184 = sst [smem:[#allocation21_spill]] %s1175_s0 }
   0x2   :  { %1185 = sst [smem:[#allocation22_spill]] %s1176_s1 }
   0x3   :  { %1186 = sst [smem:[#allocation23_spill]] %s1177_s2 }
   0x4   :  { %1187 = sst [smem:[#allocation24_spill]] %s1178_s3 }
   0x5   :  { %1188 = sst [smem:[#allocation25_spill]] %s1179_s4 }
   0x6   :  { %1189 = sst [smem:[#allocation26_spill]] %s1181_s6 }
   0x7   :  { %11 = vsyncpa [#allocation5], 0 }
   0x8   :  { %12 = vsyncpa [#allocation7], 0 }
   0x9   :  { %13 = vsyncpa [#allocation10], 0 }
   0xa   :  { %14 = vsyncpa [#allocation3], 0 }
   0xb   :  { %15 = vsyncpa [#allocation4], 0  ;;  %s832_s21 = smov 0  }
   0xc LB: > { %1190 = sst [smem:[#allocation18_spill]] %s786_s21  ;;  %s838_s22 = sadd.s32 4294967295, %s786_s21   ;;  %s786_s21 = sphi %s832_s21, %s21_s21  }
   0xd   : > { %p545_p0 = scmp.ge.s32.totalorder %s786_s21, 1  ;;  %p173_p1 = scmp.lt.s32.totalorder %s786_s21, 129 }
   0xe   : > { %p625_p4 = scmp.eq.s32.totalorder %s838_s22, 0  ;;  %s788_s24 = smov [#allocation11]  }
   0xf   : > { %p843_p3 = pnand %p545_p0, %p173_p1  ;;  %s221_s25 = sshll.u32 %s788_s24, 4  ;;  %s856_s25 = int_to_ptr.vmem [resolvable:$true] %s221_s25 }
  0x10   : > { %s1193_s1 = sld [smem:[#allocation22_spill]] }
  0x11   : > { %p609_p5 = pneg %p843_p3 }
  0x13   : > { %p852_p6 = pnand %p625_p4, %p609_p5 }
  0x15   : > { %p866_p8 = pneg %p852_p6 }
  0x16   : > { %s654_s29 = scalar_lea.hbm %s1193_s1, 128 }
  0x17   : > { %p655_p7 = scmp.ne.s32.totalorder %s1193_s1, %s654_s29  ;;  %p661_p11 = scmp.lt.u32.totalorder %s654_s29, %s1193_s1 }
  0x19   : > { %p657_p9 = pnand %p866_p8, %p655_p7 }
  0x1b   : > { %p658_p10 = pneg %p657_p9 }
  0x1d   : > { %p663_p12 = pnand %p661_p11, %p658_p10 }
  0x1f   : > { %666 = shalt.err (!%p663_p12)
}
  0x20   : > { %s789_s11 = smov [#allocation6]   ;;  %s1195_s0 = sld [smem:[#allocation21_spill]] }
  0x21   : > { %615 = dma.hbm_to_smem (!%p852_p6), %s1193_s1, 128, %s789_s11, [#allocation7]  }
  0x26   : > { %s667_s16 = scalar_lea.hbm %s1195_s0, 128 }
  0x27   : > { %p668_p13 = scmp.ne.s32.totalorder %s1195_s0, %s667_s16  ;;  %p674_p5 = scmp.lt.u32.totalorder %s667_s16, %s1195_s0 }
  0x29   : > { %p670_p0 = pnand %p668_p13, %p866_p8 }
  0x2b   : > { %p671_p1 = pneg %p670_p0 }
  0x2d   : > { %p676_p7 = pnand %p674_p5, %p671_p1 }
  0x2f   : > { %679 = shalt.err (!%p676_p7)
}
  0x30   : > { %s790_s24 = smov [#allocation2]   ;;  %s1196_s2 = sld [smem:[#allocation23_spill]] }
  0x31   : > { %612 = dma.hbm_to_smem (!%p852_p6), %s1195_s0, 128, %s790_s24, [#allocation5]  }
  0x36   : > { %s680_s7 = scalar_lea.hbm %s1196_s2, 128 }
  0x37   : > { %p681_p9 = scmp.ne.s32.totalorder %s1196_s2, %s680_s7  ;;  %p687_p12 = scmp.lt.u32.totalorder %s680_s7, %s1196_s2 }
  0x39   : > { %p683_p10 = pnand %p681_p9, %p866_p8 }
  0x3b   : > { %p684_p11 = pneg %p683_p10 }
  0x3d   : > { %p689_p13 = pnand %p687_p12, %p684_p11 }
  0x3f   : > { %692 = shalt.err (!%p689_p13)
}
  0x40   : > { %s791_s13 = smov [#allocation8]   ;;  %s1197_s3 = sld [smem:[#allocation24_spill]] }
  0x41   : > { %618 = dma.hbm_to_smem (!%p852_p6), %s1196_s2, 128, %s791_s13, [#allocation7]  }
  0x46   : > { %s693_s18 = scalar_lea.hbm %s1197_s3, 128 }
  0x47   : > { %p694_p0 = scmp.ne.s32.totalorder %s1197_s3, %s693_s18  ;;  %p700_p7 = scmp.lt.u32.totalorder %s693_s18, %s1197_s3 }
  0x49   : > { %p696_p1 = pnand %p694_p0, %p866_p8 }
  0x4b   : > { %p697_p5 = pneg %p696_p1 }
  0x4d   : > { %p702_p9 = pnand %p700_p7, %p697_p5 }
  0x4f   : > { %705 = shalt.err (!%p702_p9)
}
  0x50   : > { %s792_s28 = smov [#allocation9]   ;;  %s1198_s4 = sld [smem:[#allocation25_spill]] }
  0x51   : > { %621 = dma.hbm_to_smem (!%p852_p6), %s1197_s3, 128, %s792_s28, [#allocation10]  }
  0x56   : > { %s706_s10 = scalar_lea.hbm %s1198_s4, 256 }
  0x57   : > { %p707_p10 = scmp.ne.s32.totalorder %s1198_s4, %s706_s10  ;;  %p713_p13 = scmp.lt.u32.totalorder %s706_s10, %s1198_s4 }
  0x59   : > { %p709_p11 = pnand %p707_p10, %p866_p8 }
  0x5b   : > { %p710_p12 = pneg %p709_p11 }
  0x5d   : > { %p715_p0 = pnand %p713_p13, %p710_p12 }
  0x5f   : > { %718 = shalt.err (!%p715_p0)
}
  0x60   : > { %s719_s15 = scalar_lea.vmem %s856_s25, 256  ;;  %p727_p9 = scmp.lt.s32.totalorder %s856_s25, %s856_s25 }
  0x61   : > { %p720_p1 = scmp.ne.s32.totalorder %s856_s25, %s719_s15  ;;  %p728_p2 = scmp.lt.s32.totalorder %s719_s15, %s719_s15 }
  0x63   : > { %p722_p5 = pnand %p720_p1, %p866_p8  ;;  %p729_p10 = por %p728_p2, %p727_p9 }
  0x65   : > { %p723_p7 = pneg %p722_p5 }
  0x67   : > { %p730_p11 = pnand %p729_p10, %p723_p7 }
  0x69   : > { %733 = shalt.err (!%p730_p11)
}
  0x6a   : > { %s793_s16 = smov 128   ;;  %s794_s17 = smov 8  }
  0x6b   : > { %624 = dma.hbm_to_vmem [thread:$0]  (!%p852_p6), %s1198_s4, 256, %s856_s25, [#allocation3], %s793_s16, %s793_s16, %s794_s17  }
  0x6c   : > { %240 = sbr.rel (%p843_p3) target bundleno = 412 (0x19c), region = 44 }
  0x73   : > { %765 = dma.done.wait (%p625_p4), [#allocation5], 128  }
  0x74   : > { %767 = vsyncadd (%p625_p4), [#allocation5], 4294967168 }
  0x75   : > { %769 = dma.done.wait (%p625_p4), [#allocation7], 256  }
  0x76   : > { %771 = vsyncadd (%p625_p4), [#allocation7], 4294967040 }
  0x77   : > { %773 = dma.done.wait (%p625_p4), [#allocation10], 128  }
  0x78   : > { %775 = vsyncadd (%p625_p4), [#allocation10], 4294967168 }
  0x79   : > { %777 = dma.done.wait (%p625_p4), [#allocation3], 256  }
  0x7a   : > { %779 = vsyncadd (%p625_p4), [#allocation3], 4294967040 }
  0x7b   : > { %262 = sfence }
  0x7c   : > { %p1199_p2 = scmp.ne.s32.totalorder %s838_s22, 0 }
  0x7d   : > { %v795_v0 = vmov (!%p1199_p2), 0.0  }
  0x7e   : > { %280 = sbr.rel (%p1199_p2) target bundleno = 133 (0x85), region = 68  ;;  %281 = vst [vmem:[#allocation12] sm:$0x1] (!%p1199_p2), %v795_v0 }
  0x85 PF: > { %s972_s23 = sld [smem:[#allocation2 + %s838_s22]]  ;;  %s289_s26 = sshra.s32 %s838_s22, 7  ;;  %vm422_vm0 = vcmask 253952  }
  0x86   : > { %s975_s25 = sld [smem:[#allocation6 + %s838_s22]]  ;;  %s979_s8 = sand.u32 127, %s838_s22 }
  0x87   : > { %s981_s20 = sshll.u32 %s289_s26, 7  ;;  %s984_s24 = sld [smem:[#allocation8 + %s838_s22]] }
  0x88   : > { %s570_s27 = sadd.s32 128, %s981_s20  ;;  %s572_s28 = sadd.s32 256, %s981_s20 }
  0x89   : > { %s989_s29 = sadd.s32 %s570_s27, %s979_s8  ;;  %s992_s30 = sadd.s32 %s572_s28, %s979_s8 }
  0x8a   : > { %s995_s7 = sld [smem:[#allocation2 + %s989_s29]]  ;;  %s574_s12 = sadd.s32 384, %s981_s20 }
  0x8b   : > { %s998_s9 = sld [smem:[#allocation6 + %s989_s29]]  ;;  %s1006_s13 = sadd.s32 %s574_s12, %s979_s8 }
  0x8c   : > { %s306_s10 = sld [smem:[#allocation2 + %s992_s30]]  ;;  %s576_s14 = sadd.s32 512, %s981_s20  ;;  %v286_v2 = vstv %s975_s25 }
  0x8d   : > { %s1002_s11 = sld [smem:[#allocation6 + %s992_s30]]  ;;  %s1014_s17 = sadd.s32 %s576_s14, %s979_s8 }
  0x8e   : > { %s316_s15 = sld [smem:[#allocation2 + %s1006_s13]]  ;;  %s578_s18 = sadd.s32 640, %s981_s20 }
  0x8f   : > { %s1011_s16 = sld [smem:[#allocation6 + %s1006_s13]]  ;;  %s1024_s27 = sadd.s32 %s578_s18, %s979_s8 }
  0x90   : > { %s1018_s19 = sld [smem:[#allocation2 + %s1014_s17]]  ;;  %s580_s28 = sadd.s32 768, %s981_s20 }
  0x91   : > { %s1021_s26 = sld [smem:[#allocation6 + %s1014_s17]]  ;;  %s1034_s0 = sadd.s32 %s580_s28, %s979_s8  ;;  %v300_v6 = vstv %s998_s9 }
  0x92   : > { %s1028_s12 = sld [smem:[#allocation2 + %s1024_s27]]  ;;  %s582_s18 = sadd.s32 896, %s981_s20 }
  0x93   : > { %s1031_s14 = sld [smem:[#allocation6 + %s1024_s27]]  ;;  %s283_s3 = scalar_lea.vmem [#allocation11], %s972_s23  ;;  %v310_v4 = vstv %s1002_s11 }
  0x94   : > { %s1037_s1 = sld [smem:[#allocation2 + %s1034_s0]]  ;;  %v284_v1 = vld [vmem:[%s283_s3] sm:$0x1]  ;;  %s307_s4 = scalar_lea.vmem [#allocation11], %s306_s10 }
  0x95   : > { %s1040_s2 = sld [smem:[#allocation6 + %s1034_s0]]  ;;  %v308_v3 = vld [vmem:[%s307_s4] sm:$0x1]  ;;  %s1047_s21 = sadd.s32 %s582_s18, %s979_s8  ;;  %v320_v8 = vstv %s1011_s16  ;;  %v287_v9 = vmul.f32 %v286_v2, %v284_v1 }
  0x96   : > { %s317_s3 = scalar_lea.vmem [#allocation11], %s316_s15  ;;  %s1057_s4 = sld [smem:[#allocation2 + %s1047_s21]]  ;;  %v311_v10 = vmul.f32 %v310_v4, %v308_v3 }
  0x97   : > { %v318_v7 = vld [vmem:[%s317_s3] sm:$0x1]  ;;  %s1060_s23 = sld [smem:[#allocation6 + %s1047_s21]]  ;;  %s327_s20 = scalar_lea.vmem [#allocation11], %s1018_s19  ;;  %v330_v14 = vstv %s1021_s26 }
  0x98   : > { %s1063_s6 = sld [smem:[#allocation9 + %s838_s22]]  ;;  %v321_v12 = vmul.f32 %v320_v8, %v318_v7  ;;  %v328_v13 = vld [vmem:[%s327_s20] sm:$0x1]  ;;  %v312_v17 = vadd.f32 %v311_v10, %v287_v9  ;;  %v433_v8 = vlaneseq  ;;  %v435_v10 = vstv %s838_s22  ;;  %p635_p3 = scmp.eq.s32.totalorder %s838_s22, 127 }
  0x99   : > { %s1069_s25 = sld [smem:[#allocation9 + %s989_s29]]  ;;  %v340_v16 = vstv %s1031_s14  ;;  %v331_v20 = vmul.f32 %v330_v14, %v328_v13 }
  0x9a   : > { %1200 = sst [smem:[#allocation19_spill]] %s1037_s1  ;;  %s365_s1 = scalar_lea.vmem %s1180_s5, %s984_s24  ;;  %v434_v9 = vand.u32 127, %v433_v8 }
  0x9b   : > { %1201 = sst [smem:[#allocation20_spill]] %s1040_s2  ;;  %s297_s2 = scalar_lea.vmem [#allocation11], %s995_s7  ;;  %v366_v18 = vld [vmem:[%s365_s1] sm:$0x1]  ;;  %v332_v33 = vadd.f32 %v331_v20, %v312_v17 }
  0x9c   : > { %v298_v5 = vld [vmem:[%s297_s2] sm:$0x1]  ;;  %s1066_s2 = sld [smem:[#allocation8 + %s989_s29]]  ;;  %s337_s24 = scalar_lea.vmem [#allocation11], %s1028_s12  ;;  %vm436_vm1 = vcmp.eq.s32.totalorder %v434_v9, %v435_v10 }
  0x9d   : > { %v301_v11 = vmul.f32 %v300_v6, %v298_v5  ;;  %s1072_s8 = sld [smem:[#allocation8 + %s992_s30]]  ;;  %v338_v15 = vld [vmem:[%s337_s24] sm:$0x1]  ;;  %s357_s14 = scalar_lea.vmem [#allocation11], %s1057_s4  ;;  %v360_v27 = vstv %s1060_s23 }
  0x9e   : > { %s1202_s7 = sld [smem:[#allocation19_spill]]  ;;  %s1203_s11 = sld [smem:[#allocation20_spill]]  ;;  %v341_v21 = vmul.f32 %v340_v16, %v338_v15  ;;  %v368_v22 = vstv %s1063_s6  ;;  %v358_v26 = vld [vmem:[%s357_s14] sm:$0x1] }
  0x9f   : > { %s1079_s9 = sld [smem:[#allocation9 + %s992_s30]]  ;;  %v322_v19 = vadd.f32 %v321_v12, %v301_v11  ;;  %v375_v24 = vstv %s1069_s25  ;;  %v369_v28 = vmul.f32 %v368_v22, %v366_v18  ;;  %v361_v39 = vmul.f32 %v360_v27, %v358_v26  ;;  %v437_v11 = vld [vmem:[#allocation12] sm:$0x1] }
  0xa0   : > { %s1082_s29 = sld [smem:[#allocation8 + %s1006_s13]] }
  0xa1   : > { %s1085_s10 = sld [smem:[#allocation9 + %s1006_s13]]  ;;  %v342_v34 = vadd.f32 %v341_v21, %v322_v19 }
  0xa2   : > { %s1088_s15 = sld [smem:[#allocation8 + %s1014_s17]]  ;;  %s372_s1 = scalar_lea.vmem %s1180_s5, %s1066_s2 }
  0xa3   : > { %s1091_s16 = sld [smem:[#allocation9 + %s1014_s17]]  ;;  %v373_v29 = vld [vmem:[%s372_s1] sm:$0x1]  ;;  %s379_s28 = scalar_lea.vmem %s1180_s5, %s1072_s8  ;;  %v362_v53 = vadd.f32 %v361_v39, %v342_v34 }
  0xa4   : > { %s1095_s30 = sld [smem:[#allocation8 + %s1024_s27]]  ;;  %s347_s13 = scalar_lea.vmem [#allocation11], %s1202_s7  ;;  %v350_v25 = vstv %s1203_s11  ;;  %v376_v30 = vmul.f32 %v375_v24, %v373_v29  ;;  %v380_v31 = vld [vmem:[%s379_s28] sm:$0x1] }
  0xa5   : > { %s1098_s19 = sld [smem:[#allocation9 + %s1024_s27]]  ;;  %v348_v23 = vld [vmem:[%s347_s13] sm:$0x1]  ;;  %v382_v32 = vstv %s1079_s9 }
  0xa6   : > { %s1107_s17 = sld [smem:[#allocation8 + %s1034_s0]]  ;;  %s386_s4 = scalar_lea.vmem %s1180_s5, %s1082_s29  ;;  %v383_v35 = vmul.f32 %v382_v32, %v380_v31  ;;  %v351_v38 = vmul.f32 %v350_v25, %v348_v23 }
  0xa7   : > { %s1117_s3 = sld [smem:[#allocation9 + %s1034_s0]]  ;;  %v387_v36 = vld [vmem:[%s386_s4] sm:$0x1]  ;;  %v389_v37 = vstv %s1085_s10 }
  0xa8   : > { %s1125_s25 = sld [smem:[#allocation8 + %s1047_s21]]  ;;  %s393_s8 = scalar_lea.vmem %s1180_s5, %s1088_s15  ;;  %v390_v40 = vmul.f32 %v389_v37, %v387_v36  ;;  %v384_v43 = vadd.f32 %v383_v35, %v369_v28  ;;  %v352_v52 = vadd.f32 %v351_v38, %v332_v33 }
  0xa9   : > { %s416_s20 = sld [smem:[#allocation9 + %s1047_s21]]  ;;  %v394_v41 = vld [vmem:[%s393_s8] sm:$0x1]  ;;  %v396_v42 = vstv %s1091_s16 }
  0xaa   : > { %v397_v44 = vmul.f32 %v396_v42, %v394_v41  ;;  %s400_s9 = scalar_lea.vmem %s1180_s5, %s1095_s30  ;;  %v391_v46 = vadd.f32 %v390_v40, %v376_v30  ;;  %v363_v60 = vadd.f32 %v362_v53, %v352_v52  ;;  %s796_s30 = smov [#allocation12]  }
  0xab   : > { %v403_v45 = vstv %s1098_s19  ;;  %v401_v47 = vld [vmem:[%s400_s9] sm:$0x1]  ;;  %s448_s19 = sshll.u32 %s796_s30, 4  ;;  %s449_s19 = int_to_ptr.vmem [resolvable:$true] %s448_s19 }
  0xac   : > { %s407_s21 = scalar_lea.vmem %s1180_s5, %s1107_s17  ;;  %v398_v48 = vadd.f32 %v397_v44, %v384_v43  ;;  %v404_v49 = vmul.f32 %v403_v45, %v401_v47  ;;  %s734_s26 = scalar_lea.vmem %s449_s19, 16 }
  0xad   : > { %v408_v50 = vld [vmem:[%s407_s21] sm:$0x1]  ;;  %v410_v51 = vstv %s1117_s3  ;;  %p735_p4 = scmp.ne.s32.totalorder %s449_s19, %s734_s26  ;;  %s740_s12 = scalar_lea.vmem %s449_s19, 32 }
  0xae   : > { %v411_v54 = vmul.f32 %v410_v51, %v408_v50  ;;  %s414_s16 = scalar_lea.vmem %s1180_s5, %s1125_s25  ;;  %v405_v55 = vadd.f32 %v404_v49, %v391_v46  ;;  %p741_p12 = scmp.lt.s32.totalorder %s449_s19, %s449_s19 }
  0xaf   : > { %v415_v56 = vld [vmem:[%s414_s16] sm:$0x1]  ;;  %v417_v57 = vstv %s416_s20  ;;  %p736_p6 = pnand %p735_p4, %p635_p3  ;;  %p742_p13 = scmp.lt.s32.totalorder %s740_s12, %s734_s26 }
  0xb0   : > { %v412_v58 = vadd.f32 %v411_v54, %v398_v48  ;;  %v418_v59 = vmul.f32 %v417_v57, %v415_v56 }
  0xb1   : > { %p737_p8 = pneg %p736_p6  ;;  %p743_p0 = por %p742_p13, %p741_p12 }
  0xb2   : > { %v419_v61 = vadd.f32 %v418_v59, %v405_v55 }
  0xb3   : > { %p744_p1 = pnand %p743_p0, %p737_p8 }
  0xb4   : > { %v420_v62 = vadd.f32 %v419_v61, %v412_v58 }
  0xb6   : > { %v421_v63 = vmul.f32 %v420_v62, %v363_v60 }
  0xb8   : > { %v423_v0 = vsel %vm422_vm0, %v421_v63, 0.0 }
  0xb9   : > { %424 = vadd.xlane.f32.xlu0 %v423_v0 }
 0x146   : > { %v425_v1 = vpop.xlane.xlu0 %424 }
 0x147   : > { %v426_v2 = vrot.slane %v425_v1, 4 }
 0x149   : > { %v427_v3 = vadd.f32 %v426_v2, %v425_v1 }
 0x14b   : > { %v428_v4 = vrot.slane %v427_v3, 2 }
 0x14d   : > { %v429_v5 = vadd.f32 %v428_v4, %v427_v3 }
 0x14f   : > { %v430_v6 = vrot.slane %v429_v5, 1 }
 0x151   : > { %v431_v7 = vadd.f32 %v430_v6, %v429_v5 }
 0x153   : > { %583 = vpush %v431_v7 }
 0x184   : > { %s584_s13 = spop %583 }
 0x185   : > { %v438_v12 = vstv %s584_s13 }
 0x186   : > { %v439_v13 = vsel %vm436_vm1, %v438_v12, %v437_v11 }
 0x187   : > { %440 = vst [vmem:[#allocation12] sm:$0x1] %v439_v13 }
 0x188   : > { %747 = shalt.err (!%p744_p1)
}
 0x189   : > { %s1204_s14 = sld [smem:[#allocation26_spill]] }
 0x18f   : > { %s748_s27 = scalar_lea.hbm %s1204_s14, 16 }
 0x190   : > { %p749_p5 = scmp.ne.s32.totalorder %s1204_s14, %s748_s27  ;;  %p754_p10 = scmp.lt.u32.totalorder %s748_s27, %s1204_s14 }
 0x192   : > { %p750_p7 = pnand %p749_p5, %p635_p3 }
 0x194   : > { %p751_p9 = pneg %p750_p7 }
 0x196   : > { %p756_p11 = pnand %p754_p10, %p751_p9 }
 0x198   : > { %759 = shalt.err (!%p756_p11)
}
 0x199   : > { %606 = dma.vmem_to_hbm [thread:$0]  (%p635_p3), %s449_s19, 16, %s1204_s14, [#allocation4]  }
 0x19a   : > { %781 = dma.done.wait (%p635_p3), [#allocation4], 16  }
 0x19b   : > { %783 = vsyncadd (%p635_p3), [#allocation4], 4294967280 }
 0x19c PF: > { %s1205_s25 = sld [smem:[#allocation18_spill]] }
 0x1a2   : > { %s21_s21 = sadd.s32 1, %s1205_s25  }
 0x1a3   : > { %p18_p2 = scmp.ge.s32.totalorder %s21_s21, 130  }
 0x1a5   :  { %20 = sbr.rel (!%p18_p2) target bundleno = 12 (0xc), region = 110 }
 0x1ac   :  { %461 = vsyncpa [#allocation3], 1 }
 0x1ad   :  { %463 = vsyncpa [#allocation3 + $0x1], 1 }
 0x1ae   :  { %464 = vsyncpa [#allocation4], 1 }
 0x1af   :  { %466 = vsyncpa [#allocation4 + $0x1], 1 }
 0x1b0   :  { %467 = vsyncpa [#allocation5], 1 }
 0x1b1   :  { %469 = vsyncpa [#allocation5 + $0x1], 1 }
 0x1b2   :  { %470 = vsyncpa [#allocation7], 1 }
 0x1b3   :  { %471 = vsyncpa [#allocation10], 1 }

</bundles_post_ra>
